<compile_context>
chip_gen: v7x
topology: tpu7x:2x2x1
jax: 0.10.0
libtpu: 0.0.40
codegen_flags: <defaults>
</compile_context>

<pallas_src>
import jax
import jax.numpy as jnp
from jax import lax
from jax.experimental import pallas as pl
from jax.experimental.pallas import tpu as pltpu

LANE = 128        # TPU lane width
SUB = 8           # vreg sublane depth; final-layer pad target
NEG_BIG = -1e30   # finite "minus infinity" for padded softmax rows (no NaN risk)


def _round_up(n, m):
    return ((n + m - 1) // m) * m


def attention_mlp_kernel(x_ref, w1_ref, b1_ref, w2_ref, b2_ref, w3t_ref, b3t_ref, o_ref):
    """Fused MLP + softmax over one batch tile.

    Matmuls run on the MXU with f32 accumulation; bias/ReLU/softmax stay f32 on the VPU/EUP;
    the last matmul and the softmax are computed transposed so the output block is the compact
    (8, tb) layout (sublane reductions ride the otherwise-idle XLU).
    """
    # x arrives f32; cast to the MXU compute dtype in VMEM (free, hidden under DMA).
    x = x_ref[...].astype(w1_ref.dtype)

    h1 = jnp.dot(x, w1_ref[...], preferred_element_type=jnp.float32) + b1_ref[...]
    h1 = jnp.maximum(h1, 0.0).astype(w2_ref.dtype)

    h2 = jnp.dot(h1, w2_ref[...], preferred_element_type=jnp.float32) + b2_ref[...]
    h2 = jnp.maximum(h2, 0.0).astype(w3t_ref.dtype)

    # logits_t[o, b] = sum_k w3t[o, k] * h2[b, k]  ->  (8, tb).
    # Rows >= out_dim of w3t have zero weights and -1e30 bias, so they never win the max and
    # exp() to exactly 0 (no probability mass is stolen from the real classes).
    logits_t = lax.dot_general(
        w3t_ref[...], h2, (((1,), (1,)), ((), ())),
        preferred_element_type=jnp.float32,
    ) + b3t_ref[...]

    # Softmax along the 8-deep sublane axis.  Exact normalization: rows sum to exactly 1;
    # the divide is fully hidden since the kernel is HBM-bandwidth bound.
    m = jnp.max(logits_t, axis=0, keepdims=True)
    e = jnp.exp(logits_t - m)
    denom = jnp.sum(e, axis=0, keepdims=True)
    o_ref[...] = (e / denom).astype(o_ref.dtype)


def attention_network_forward(x, params, *, compute_dtype=jnp.float32, batch_tile=4096):
    """Forward pass of AttentionNetwork.

    x: (B, input_dim) float32.
    params: w1 (in,64), b1 (1,64), w2 (64,32), b2 (1,32), w3 (32,out), b3 (1,out).
    compute_dtype: jnp.float32 (exact) or jnp.bfloat16 (MXU fast path; fine on v5e/v6e/v7x —
      all elementwise / softmax math stays f32).
    batch_tile: max rows per grid step (rounded down to a multiple of 128).
    Returns (B, out_dim) float32 softmax probabilities.
    """
    B, input_dim = x.shape
    h2_dim, out_dim = params["w3"].shape
    assert out_dim <= SUB, "final layer is padded to 8 sublanes"

    # --- final layer in transposed, sublane-padded form ---
    w3t = jnp.zeros((SUB, h2_dim), params["w3"].dtype).at[:out_dim, :].set(params["w3"].T)
    b3t = jnp.full((SUB, 1), NEG_BIG, jnp.float32).at[:out_dim, :].set(
        params["b3"].reshape(out_dim, 1).astype(jnp.float32))

    # --- dtype prep: weights in compute_dtype (tiny, one-time); x stays f32 (cast in-kernel);
    #     biases / elementwise math stay f32 ---
    w1 = params["w1"].astype(compute_dtype)
    w2 = params["w2"].astype(compute_dtype)
    w3t = w3t.astype(compute_dtype)
    b1 = params["b1"].astype(jnp.float32)
    b2 = params["b2"].astype(jnp.float32)

    # --- batch tile selection ---
    # Lane-aligned (multiple of 128) so the (8, tb) output store is a full-lane vst, big enough
    # to amortize per-step pipeline overhead, and chosen so B > 256 gives >= 2 grid steps
    # (v7x 2-TensorCore sharding of the "parallel" batch axis).
    batch_tile = max(LANE, (int(batch_tile) // LANE) * LANE)
    if B <= 2 * LANE:
        tb = B                                   # single step; blocks equal full array dims
    else:
        tb = min(batch_tile, _round_up(pl.cdiv(B, 2), LANE))
    grid = (pl.cdiv(B, tb),)
    # NOTE: when B % tb != 0 the last tile computes on stale VMEM rows; those columns of the
    # (8, tb) output block lie past B and are discarded by the bounded write -> benign.
    # Do NOT "fix" this with masking.

    resident = lambda shape: pl.BlockSpec(shape, lambda i: (0, 0))  # weights stay in VMEM

    # Double-buffered pipeline footprint (x + out tiles); weights are tiny & resident.
    pipe_bytes = 2 * tb * input_dim * jnp.dtype(x.dtype).itemsize + 2 * SUB * tb * 4
    compiler_kwargs = dict(dimension_semantics=("parallel",))
    if pipe_bytes > 12 * 1024 * 1024:  # only needed above v5e's 16 MiB scoped-VMEM default
        compiler_kwargs["vmem_limit_bytes"] = min(2 * pipe_bytes + (8 << 20), 64 << 20)

    out_t = pl.pallas_call(
        attention_mlp_kernel,
        out_shape=jax.ShapeDtypeStruct((SUB, B), jnp.float32),
        grid=grid,
        in_specs=[
            pl.BlockSpec((tb, input_dim), lambda i: (i, 0)),  # x: tiled along batch
            resident(w1.shape),
            resident(b1.shape),
            resident(w2.shape),
            resident(b2.shape),
            resident(w3t.shape),
            resident(b3t.shape),
        ],
        out_specs=pl.BlockSpec((SUB, tb), lambda i: (0, i)),   # batch on the lane axis
        compiler_params=pltpu.CompilerParams(**compiler_kwargs),
    )(x, w1, b1, w2, b2, w3t, b3t)

    # Tiny epilogue: touches ~out_dim*B elements, vs re-reading a full (B, 128) padded
    # buffer in the previous lane-padded layout.
    return out_t[:out_dim, :].T


def init_params(key, input_dim, output_dim=3):
    """PyTorch nn.Linear-style uniform(+-1/sqrt(fan_in)) init; weights stored as (in, out)."""
    def linear_init(k, fan_in, fan_out):
        kw, kb = jax.random.split(k)
        bound = 1.0 / jnp.sqrt(fan_in)
        w = jax.random.uniform(kw, (fan_in, fan_out), jnp.float32, -bound, bound)
        b = jax.random.uniform(kb, (1, fan_out), jnp.float32, -bound, bound)
        return w, b

    k1, k2, k3 = jax.random.split(key, 3)
    w1, b1 = linear_init(k1, input_dim, 64)
    w2, b2 = linear_init(k2, 64, 32)
    w3, b3 = linear_init(k3, 32, output_dim)
    return {"w1": w1, "b1": b1, "w2": w2, "b2": b2, "w3": w3, "b3": b3}


def reference_forward(x, p):
    h1 = jnp.maximum(x @ p["w1"] + p["b1"], 0.0)
    h2 = jnp.maximum(h1 @ p["w2"] + p["b2"], 0.0)
    return jax.nn.softmax(h2 @ p["w3"] + p["b3"], axis=-1)


if __name__ == "__main__":
    key = jax.random.PRNGKey(0)
    k_x, k_p, k_x2 = jax.random.split(key, 3)

    batch, input_dim, output_dim = 8, 32, 3
    x = jax.random.normal(k_x, (batch, input_dim), jnp.float32)
    params = init_params(k_p, input_dim, output_dim)
    ref = reference_forward(x, params)

    # f32 path (near-exact; single grid step)
    out = jax.block_until_ready(attention_network_forward(x, params))
    assert out.shape == (batch, output_dim)
    assert jnp.allclose(out, ref, atol=1e-3, rtol=1e-3)
    assert jnp.allclose(jnp.sum(out, axis=-1), 1.0, atol=1e-3)

    # bf16 MXU fast path (looser element tolerance; normalization still exact f32)
    out_bf16 = jax.block_until_ready(
        attention_network_forward(x, params, compute_dtype=jnp.bfloat16))
    assert out_bf16.shape == (batch, output_dim)
    assert bool(jnp.all(jnp.isfinite(out_bf16)))
    assert jnp.allclose(out_bf16, ref, atol=5e-2)
    assert jnp.allclose(jnp.sum(out_bf16, axis=-1), 1.0, atol=1e-3)

    # multi-tile path: exercises the grid, the partial last tile and the (8, B) output layout
    batch2 = 300
    x2 = jax.random.normal(k_x2, (batch2, input_dim), jnp.float32)
    ref2 = reference_forward(x2, params)
    out2 = jax.block_until_ready(attention_network_forward(x2, params))
    assert out2.shape == (batch2, output_dim)
    assert jnp.allclose(out2, ref2, atol=1e-3, rtol=1e-3)
    assert jnp.allclose(jnp.sum(out2, axis=-1), 1.0, atol=1e-3)

    print("KERNEL_OK")
</pallas_src>

<mosaic_0001>
module attributes {stable_mosaic.version = 11 : i64} {
  func.func @attention_mlp_kernel(%arg0: i32, %arg1: memref<8x32xf32, #tpu.memory_space<vmem>>, %arg2: memref<32x64xf32, #tpu.memory_space<vmem>>, %arg3: memref<1x64xf32, #tpu.memory_space<vmem>>, %arg4: memref<64x32xf32, #tpu.memory_space<vmem>>, %arg5: memref<1x32xf32, #tpu.memory_space<vmem>>, %arg6: memref<8x32xf32, #tpu.memory_space<vmem>>, %arg7: memref<8x1xf32, #tpu.memory_space<vmem>>, %arg8: memref<8x8xf32, #tpu.memory_space<vmem>>) attributes {dimension_semantics = [#tpu.dimension_semantics<parallel>], iteration_bounds = array<i64: 1>, scalar_prefetch = 0 : i64, scratch_operands = 0 : i64, tpu.core_type = #tpu.core_type<tc>, window_params = [{transform_indices = @transform_0, window_bounds = array<i64: 8, 32>}, {pipeline_mode = #tpu.pipeline_mode<synchronous>, transform_indices = @transform_1, window_bounds = array<i64: 32, 64>}, {pipeline_mode = #tpu.pipeline_mode<synchronous>, transform_indices = @transform_2, window_bounds = array<i64: 1, 64>}, {pipeline_mode = #tpu.pipeline_mode<synchronous>, transform_indices = @transform_3, window_bounds = array<i64: 64, 32>}, {pipeline_mode = #tpu.pipeline_mode<synchronous>, transform_indices = @transform_4, window_bounds = array<i64: 1, 32>}, {pipeline_mode = #tpu.pipeline_mode<synchronous>, transform_indices = @transform_5, window_bounds = array<i64: 8, 32>}, {pipeline_mode = #tpu.pipeline_mode<synchronous>, transform_indices = @transform_6, window_bounds = array<i64: 8, 1>}, {transform_indices = @transform_7, window_bounds = array<i64: 8, 8>}]} {
    %c0 = arith.constant 0 : index
    %c0_0 = arith.constant 0 : index
    %0 = vector.load %arg1[%c0, %c0_0] : memref<8x32xf32, #tpu.memory_space<vmem>>, vector<8x32xf32>
    %c0_1 = arith.constant 0 : index
    %c0_2 = arith.constant 0 : index
    %1 = vector.load %arg2[%c0_1, %c0_2] : memref<32x64xf32, #tpu.memory_space<vmem>>, vector<32x64xf32>
    %cst = arith.constant dense<0.000000e+00> : vector<8x64xf32>
    %2 = tpu.matmul %0, %1, %cst {dimension_numbers = #tpu.dot_dimension_numbers<[1], [0], [0], [1], [0, 0, 1, 1], [], []>} : vector<8x32xf32>, vector<32x64xf32>, vector<8x64xf32> -> vector<8x64xf32>
    %c0_3 = arith.constant 0 : index
    %c0_4 = arith.constant 0 : index
    %3 = vector.load %arg3[%c0_3, %c0_4] : memref<1x64xf32, #tpu.memory_space<vmem>>, vector<1x64xf32>
    %4 = vector.broadcast %3 : vector<1x64xf32> to vector<8x64xf32>
    %5 = arith.addf %2, %4 : vector<8x64xf32>
    %cst_5 = arith.constant 0.000000e+00 : f32
    %6 = vector.broadcast %cst_5 : f32 to vector<8x64xf32>
    %7 = arith.maximumf %5, %6 : vector<8x64xf32>
    %c0_6 = arith.constant 0 : index
    %c0_7 = arith.constant 0 : index
    %8 = vector.load %arg4[%c0_6, %c0_7] : memref<64x32xf32, #tpu.memory_space<vmem>>, vector<64x32xf32>
    %cst_8 = arith.constant dense<0.000000e+00> : vector<8x32xf32>
    %9 = tpu.matmul %7, %8, %cst_8 {dimension_numbers = #tpu.dot_dimension_numbers<[1], [0], [0], [1], [0, 0, 1, 1], [], []>} : vector<8x64xf32>, vector<64x32xf32>, vector<8x32xf32> -> vector<8x32xf32>
    %c0_9 = arith.constant 0 : index
    %c0_10 = arith.constant 0 : index
    %10 = vector.load %arg5[%c0_9, %c0_10] : memref<1x32xf32, #tpu.memory_space<vmem>>, vector<1x32xf32>
    %11 = vector.broadcast %10 : vector<1x32xf32> to vector<8x32xf32>
    %12 = arith.addf %9, %11 : vector<8x32xf32>
    %cst_11 = arith.constant 0.000000e+00 : f32
    %13 = vector.broadcast %cst_11 : f32 to vector<8x32xf32>
    %14 = arith.maximumf %12, %13 : vector<8x32xf32>
    %c0_12 = arith.constant 0 : index
    %c0_13 = arith.constant 0 : index
    %15 = vector.load %arg6[%c0_12, %c0_13] : memref<8x32xf32, #tpu.memory_space<vmem>>, vector<8x32xf32>
    %cst_14 = arith.constant dense<0.000000e+00> : vector<8x8xf32>
    %16 = tpu.matmul %15, %14, %cst_14 {dimension_numbers = #tpu.dot_dimension_numbers<[1], [1], [0], [0], [0, 0, 1, 0], [], []>} : vector<8x32xf32>, vector<8x32xf32>, vector<8x8xf32> -> vector<8x8xf32>
    %c0_15 = arith.constant 0 : index
    %c0_16 = arith.constant 0 : index
    %17 = vector.load %arg7[%c0_15, %c0_16] : memref<8x1xf32, #tpu.memory_space<vmem>>, vector<8x1xf32>
    %18 = vector.broadcast %17 : vector<8x1xf32> to vector<8x8xf32>
    %19 = arith.addf %16, %18 : vector<8x8xf32>
    %cst_17 = arith.constant dense<0xFF800000> : vector<8xf32>
    %20 = vector.multi_reduction <maximumf>, %19, %cst_17 [0] : vector<8x8xf32> to vector<8xf32>
    %21 = vector.shape_cast %20 : vector<8xf32> to vector<1x8xf32>
    %22 = vector.broadcast %21 : vector<1x8xf32> to vector<8x8xf32>
    %23 = arith.subf %19, %22 : vector<8x8xf32>
    %24 = math.exp %23 : vector<8x8xf32>
    %cst_18 = arith.constant dense<0.000000e+00> : vector<8xf32>
    %25 = vector.multi_reduction <add>, %24, %cst_18 [0] : vector<8x8xf32> to vector<8xf32>
    %26 = vector.shape_cast %25 : vector<8xf32> to vector<1x8xf32>
    %27 = vector.broadcast %26 : vector<1x8xf32> to vector<8x8xf32>
    %28 = arith.divf %24, %27 : vector<8x8xf32>
    %c0_19 = arith.constant 0 : index
    %c0_20 = arith.constant 0 : index
    %29 = vector.load %arg8[%c0_19, %c0_20] : memref<8x8xf32, #tpu.memory_space<vmem>>, vector<8x8xf32>
    tpu.vector_store %arg8[%c0_19, %c0_20], %28 {strides = array<i32>} : memref<8x8xf32, #tpu.memory_space<vmem>>, vector<8x8xf32>,
    return
  }
  func.func @transform_0(%arg0: i32) -> (i32, i32) {
    %c0_i32 = arith.constant 0 : i32
    %c0_i32_0 = arith.constant 0 : i32
    return %arg0, %c0_i32 : i32, i32
  }
  func.func @transform_1(%arg0: i32) -> (i32, i32) {
    %c0_i32 = arith.constant 0 : i32
    %c0_i32_0 = arith.constant 0 : i32
    %c0_i32_1 = arith.constant 0 : i32
    return %c0_i32, %c0_i32_0 : i32, i32
  }
  func.func @transform_2(%arg0: i32) -> (i32, i32) {
    %c0_i32 = arith.constant 0 : i32
    %c0_i32_0 = arith.constant 0 : i32
    %c0_i32_1 = arith.constant 0 : i32
    return %c0_i32, %c0_i32_0 : i32, i32
  }
  func.func @transform_3(%arg0: i32) -> (i32, i32) {
    %c0_i32 = arith.constant 0 : i32
    %c0_i32_0 = arith.constant 0 : i32
    %c0_i32_1 = arith.constant 0 : i32
    return %c0_i32, %c0_i32_0 : i32, i32
  }
  func.func @transform_4(%arg0: i32) -> (i32, i32) {
    %c0_i32 = arith.constant 0 : i32
    %c0_i32_0 = arith.constant 0 : i32
    %c0_i32_1 = arith.constant 0 : i32
    return %c0_i32, %c0_i32_0 : i32, i32
  }
  func.func @transform_5(%arg0: i32) -> (i32, i32) {
    %c0_i32 = arith.constant 0 : i32
    %c0_i32_0 = arith.constant 0 : i32
    %c0_i32_1 = arith.constant 0 : i32
    return %c0_i32, %c0_i32_0 : i32, i32
  }
  func.func @transform_6(%arg0: i32) -> (i32, i32) {
    %c0_i32 = arith.constant 0 : i32
    %c0_i32_0 = arith.constant 0 : i32
    %c0_i32_1 = arith.constant 0 : i32
    return %c0_i32, %c0_i32_0 : i32, i32
  }
  func.func @transform_7(%arg0: i32) -> (i32, i32) {
    %c0_i32 = arith.constant 0 : i32
    %c0_i32_0 = arith.constant 0 : i32
    return %c0_i32, %arg0 : i32, i32
  }
}

</mosaic_0001>

<bundles_post_ra>
// kernel: tpu_custom_call.1
= control target key start
LH: loop header
LB: loop body
LE: loop exit
PB: predicated region body
PF: predicated region fallthrough
CT: control target
= control target key end

     0   :  { %v431_v3 = vmov 0.0|0.0   ;;  %vm432_vm0 = vmmov 0   ;;  %v433_v6 = vmov 0.0   ;;  %s548_s0 = inlined_call_operand.vmem [shape: f32[8,32], index: 0, kind: input, shape index: {}]   ;;  %s549_s1 = inlined_call_operand.vmem [shape: f32[32,64], index: 1, kind: input, shape index: {}]   ;;  %s550_s2 = inlined_call_operand.vmem [shape: f32[1,64], index: 2, kind: input, shape index: {}]   ;;  %s551_s3 = inlined_call_operand.vmem [shape: f32[64,32], index: 3, kind: input, shape index: {}]   ;;  %s552_s4 = inlined_call_operand.vmem [shape: f32[1,32], index: 4, kind: input, shape index: {}]   ;;  %s553_s5 = inlined_call_operand.vmem [shape: f32[8,32], index: 5, kind: input, shape index: {}]   ;;  %s554_s6 = inlined_call_operand.vmem [shape: f32[8,1], index: 6, kind: input, shape index: {}]   ;;  %s555_s7 = inlined_call_operand.hbm [shape: f32[8,8], index: 7, kind: output, shape index: {}]  }
   0x1   :  { %v28_v0 = vld [vmem:[%s549_s1] sm:$0xff]  ;;  %v29_v1 = vld [vmem:[%s549_s1 + $0x8] sm:$0xff]  ;;  %v30_v2 = vld [vmem:[%s549_s1 + $0x10] sm:$0xff]  ;;  %379 = vmatprep.subr.bf16.mxu0 %v431_v3  ;;  %352 = vmatprep.mubr.msk.f32.mxu0 %vm432_vm0, %v433_v6 }
   0x2   :  { %v380_v4 = vpack.c.bf16 %v29_v1, %v28_v0  ;;  %v31_v5 = vld [vmem:[%s549_s1 + $0x18] sm:$0xff]  ;;  %v114_v7 = vld [vmem:[%s551_s3] sm:$0xff]  ;;  %385 = vmatprep.subr.bf16.mxu1 %v431_v3  ;;  %v115_v8 = vld [vmem:[%s551_s3 + $0x8] sm:$0xff]  ;;  %371 = vmatprep.mubr.msk.f32.mxu1 %vm432_vm0, %v433_v6 }
   0x3   :  { %v116_v9 = vld [vmem:[%s551_s3 + $0x10] sm:$0xff]  ;;  %v117_v10 = vld [vmem:[%s551_s3 + $0x18] sm:$0xff]  ;;  %v383_v11 = vpack.c.bf16 %v31_v5, %v30_v2  ;;  %v386_v12 = vpack.c.bf16 %v115_v8, %v114_v7 }
   0x4   :  { %381 = vmatpush3.bf16.msra.mxu0 %v380_v4 }
   0x5   :  { %382 = vmatprep.subr.bf16.mxu0 %v431_v3 }
   0x6   :  { %12 = vsyncpa [#allocation3], 0  ;;  %387 = vmatpush3.bf16.msra.mxu1 %v386_v12  ;;  %v389_v13 = vpack.c.bf16 %v117_v10, %v116_v9  ;;  %v118_v14 = vld [vmem:[%s551_s3 + $0x20] sm:$0xff]  ;;  %v119_v15 = vld [vmem:[%s551_s3 + $0x28] sm:$0xff]  ;;  %vm39_vm1 = vcmask 261120   ;;  %vm129_vm2 = vcmask 523264  }
   0x7   :  { %388 = vmatprep.subr.bf16.mxu1 %v431_v3  ;;  %v27_v16 = vld [vmem:[%s548_s0] sm:$0xff]  ;;  %v392_v17 = vpack.c.bf16 %v119_v15, %v118_v14  ;;  %v120_v18 = vld [vmem:[%s551_s3 + $0x30] sm:$0xff]  ;;  %v121_v19 = vld [vmem:[%s551_s3 + $0x38] sm:$0xff]  ;;  %v434_v27 = vmov 0   ;;  %vm287_vm3 = vcmask 64512  }
   0x8   :  { %384 = vmatpush3.bf16.msra.mxu0 %v383_v11  ;;  %v395_v20 = vpack.c.bf16 %v121_v19, %v120_v18  ;;  %v322_v21 = vld [vmem:[%s550_s2] ss:$0 sm:$0xff]  ;;  %402 = vset.pattern.permute.xlu0 %v434_v27 }
   0x9   :  { %374 = vmatprep.subr.mxu0 %v433_v6  ;;  %v205_v26 = vld [vmem:[%s554_s6] sm:$0xff] }
   0xa   :  { %390 = vmatpush3.bf16.msra.mxu1 %v389_v13  ;;  %208 = vperm.xlu0 %402, %v205_v26   ;;  %v324_v28 = vld [vmem:[%s552_s4] ss:$0 sm:$0xff]  ;;  %s435_s4 = smov [#allocation2]  }
   0xb   :  { %353 = vmatmul.mubr.msk.f32.vlgmr.msra.gmra.mrb[0].mxu0 %vm39_vm1, %v27_v16  ;;  %391 = vmatprep.subr.bf16.mxu1 %v431_v3  ;;  %v204_v33 = vld [vmem:[%s553_s5] sm:$0xff]  ;;  %s314_s5 = sshll.u32 %s435_s4, 4  ;;  %s315_s5 = int_to_ptr.vmem [resolvable:$true] %s314_s5 }
   0xc   :  { %376 = vmatprep.mubr.msk.f32.mxu0 %vm432_vm0, %v433_v6  ;;  %s407_s6 = scalar_lea.vmem %s315_s5, 128  ;;  %p412_p1 = scmp.lt.s32.totalorder %s315_s5, %s315_s5 }
   0xd   :  { %p408_p0 = scmp.ne.s32.totalorder %s315_s5, %s407_s6  ;;  %p413_p2 = scmp.lt.s32.totalorder %s407_s6, %s407_s6 }
   0xe   :  { %393 = vmatpush3.bf16.msra.mxu1 %v392_v17 }
   0xf   :  { %394 = vmatprep.subr.bf16.mxu1 %v431_v3  ;;  %p414_p3 = por %p413_p2, %p412_p1 }
  0x11   :  { %p415_p4 = pnand %p414_p3, %p408_p0 }
  0x12   :  { %396 = vmatpush3.bf16.msra.mxu1 %v395_v20 }
  0x89   :  { %v209_v34 = vpop.permute.xlu0 %208 }
  0xde   :  { %v109_v22 = vpop.f32.mrb[0].mxu0 }
  0xdf   :  { %v110_v23 = vadd.f32 %v322_v21, %v109_v22  ;;  %v354_v24 = vpop.f32.mrb[1].mxu0 }
  0xe1   :  { %v113_v25 = vmax.f32 %v110_v23, 0.0 }
  0xe3   :  { %372 = vmatmul.mubr.msk.f32.vlgmr.msra.gmra.mrb[0].mxu1 %vm129_vm2, %v113_v25 }
 0x1b6   :  { %v199_v29 = vpop.f32.mrb[0].mxu1 }
 0x1b7   :  { %v200_v30 = vadd.f32 %v324_v28, %v199_v29  ;;  %v373_v31 = vpop.f32.mrb[1].mxu1 }
 0x1b9   :  { %v203_v32 = vmax.f32 %v200_v30, 0.0 }
 0x1bb   :  { %375 = vmatpush3.xpose.msk.msra.mxu0 %vm39_vm1, %v203_v32 }
 0x1be   :  { %377 = vmatmul.mubr.msk.f32.vlgmr.msra.gmra.mrb[2].mxu0 %vm39_vm1, %v204_v33 }
 0x291   :  { %v283_v35 = vpop.f32.mrb[2].mxu0 }
 0x292   :  { %v284_v36 = vadd.f32 %v283_v35, %v209_v34  ;;  %v378_v37 = vpop.f32.mrb[3].mxu0 }
 0x294   :  { %v288_v38 = vsel %vm287_vm3, %v284_v36, -inf }
 0x295   :  { %v289_v39 = vrot.slane %v288_v38, 4 }
 0x297   :  { %v290_v40 = vmax.f32 %v288_v38, %v289_v39 }
 0x299   :  { %v291_v41 = vrot.slane %v290_v40, 2 }
 0x29b   :  { %v292_v42 = vmax.f32 %v290_v40, %v291_v41 }
 0x29d   :  { %v293_v43 = vrot.slane %v292_v42, 1 }
 0x29f   :  { %v294_v44 = vmax.f32 %v292_v42, %v293_v43 }
 0x2a1   :  { %v295_v45 = vsub.f32 %v284_v36, %v294_v44 }
 0x2a3   :  { %v296_v46 = vmul.f32 1.442695, %v295_v45 }
 0x2a5   :  { %403 = vpow2.f32 %v296_v46 }
 0x2af   :  { %v404_v47 = vpop.eup %403 }
 0x2b0   :  { %v298_v48 = vsel %vm287_vm3, %v404_v47, 0.0 }
 0x2b1   :  { %v299_v49 = vrot.slane %v298_v48, 4 }
 0x2b3   :  { %v300_v50 = vadd.f32 %v299_v49, %v298_v48 }
 0x2b5   :  { %v301_v51 = vrot.slane %v300_v50, 2 }
 0x2b7   :  { %v302_v52 = vadd.f32 %v301_v51, %v300_v50 }
 0x2b9   :  { %v303_v53 = vrot.slane %v302_v52, 1 }
 0x2bb   :  { %v304_v54 = vadd.f32 %v303_v53, %v302_v52 }
 0x2bd   :  { %405 = vrcp.f32 %v304_v54 }
 0x2c7   :  { %v406_v55 = vpop.eup %405 }
 0x2c8   :  { %v306_v56 = vmul.f32 %v406_v55, %v404_v47 }
 0x2ca   :  { %307 = vst.msk [vmem:[#allocation2] sm:$0xff] %vm287_vm3, %v306_v56 }
 0x2cb   :  { %418 = shalt.err (!%p415_p4)
}
 0x2cc   :  { %s419_s10 = scalar_lea.hbm %s555_s7, 128 }
 0x2cd   :  { %p420_p5 = scmp.ne.s32.totalorder %s555_s7, %s419_s10  ;;  %p423_p6 = scmp.lt.u32.totalorder %s419_s10, %s555_s7 }
 0x2cf   :  { %p425_p7 = pnand %p423_p6, %p420_p5 }
 0x2d1   :  { %428 = shalt.err (!%p425_p7)
}
 0x2d2   :  { %317 = dma.vmem_to_hbm [thread:$0]  %s315_s5, 128, %s555_s7, [#allocation3]  }
 0x2d3   :  { %429 = dma.done.wait [#allocation3], 128  }
 0x2d4   :  { %430 = vsyncadd [#allocation3], 4294967168 }
 0x2d5   :  { %321 = vsyncpa [#allocation3], 1 }

</bundles_post_ra>
